<compile_context>
chip_gen: v6e
topology: v6e:2x2x1
jax: 0.10.0
libtpu: 0.0.40
codegen_flags: <defaults>
</compile_context>

<pallas_src>
import functools

import jax
import jax.numpy as jnp
from jax.experimental import pallas as pl
from jax.experimental.pallas import tpu as pltpu


def _round_up(n, m):
    return ((n + m - 1) // m) * m


def _selector_kernel(xt_ref, w1_ref, b1_ref, w2_ref, b2_ref, o_ref):
    # xt_ref: (E, tm) block of the transposed input (flattened rows on lanes).
    # fc1 (transposed): (H1, E) @ (E, tm) -> (H1, tm), f32 accumulation on MXU.
    h = jnp.dot(w1_ref[...], xt_ref[...], preferred_element_type=jnp.float32)
    h = h + b1_ref[...]                       # (H1, 1) broadcast along lanes
    h = jnp.where(h >= 0, h, 0.01 * h)        # LeakyReLU(0.01), f32 on the VPU
    # fc2 (transposed): (out, H1) @ (H1, tm) -> (out, tm) lane-dense output row.
    o = jnp.dot(w2_ref[...], h, preferred_element_type=jnp.float32) + b2_ref[...]
    o_ref[...] = o.astype(o_ref.dtype)


def selector_forward(inputs, params, *, block_m=512, compute_dtype=jnp.float32):
    """inputs: (B, S, ...) with prod(trailing dims) == embed_size.

    Returns (B, S) if out_size == 1 (matching .squeeze(2)), else (B, S, out_size).
    """
    w1, b1, w2, b2 = params                   # w1:(H1,E) b1:(H1,1) w2:(out,H1) b2:(out,1)
    B, S = inputs.shape[0], inputs.shape[1]
    x = inputs.reshape(B, S, -1)              # .contiguous().view(B, S, -1)
    E = x.shape[-1]
    H1 = w1.shape[0]
    out_size = w2.shape[0]
    assert block_m % 128 == 0, "block_m must be a multiple of 128 (lane width)"

    M = B * S
    # Transposed orientation: flattened rows live on the lane axis, so fc1's MXU
    # N-dim is tm and the output stores are lane-dense.  The transpose is
    # wrapper-side layout plumbing fused by XLA with the reshape / pad / cast.
    x_t = x.reshape(M, E).T.astype(compute_dtype)     # (E, M)
    w1c = w1.astype(compute_dtype)                    # streamed weight in compute dtype
    # w2 / biases stay f32 (tiny, keeps fc2 + elementwise math in f32 on all gens).

    if M <= block_m:
        tm, Mp = M, M                          # single grid step, no padding
    else:
        tm = block_m
        Mp = _round_up(M, tm)
        if Mp != M:
            # TODO(synk): mask the tail block in-kernel instead of padding to avoid
            # one extra HBM pass over x when M % block_m != 0.
            x_t = jnp.pad(x_t, ((0, 0), (0, Mp - M)))

    grid = (Mp // tm,)

    # Grid-invariant params: constant index_maps -> kept resident in VMEM.
    const = lambda shape: pl.BlockSpec(shape, lambda m, _s=len(shape): (0,) * _s)

    itemsize = jnp.dtype(compute_dtype).itemsize
    # Explicit VMEM budget (double-buffered x/out tiles + resident weights +
    # fc1 intermediate) with headroom; keeps us well inside v7x's 64 MiB.
    vmem_bytes = (2 * E * tm * itemsize            # x^T tiles (double-buffered)
                  + 2 * out_size * tm * 4          # output tiles (double-buffered)
                  + E * H1 * itemsize + H1 * 4     # W1, b1 (resident)
                  + H1 * out_size * 4 + out_size * 4
                  + H1 * tm * 4)                   # fc1 intermediate
    flops = 2 * M * (E * H1 + H1 * out_size)
    bytes_accessed = (M * E * itemsize + E * H1 * itemsize
                      + (H1 + H1 * out_size + out_size) * 4
                      + M * out_size * 4)

    out = pl.pallas_call(
        _selector_kernel,
        out_shape=jax.ShapeDtypeStruct((out_size, Mp), jnp.float32),
        grid_spec=pltpu.PrefetchScalarGridSpec(
            num_scalar_prefetch=0,
            grid=grid,
            in_specs=[
                pl.BlockSpec((E, tm), lambda m: (0, m)),   # x^T, streamed over M
                const((H1, E)),                            # W1 (resident)
                const((H1, 1)),                            # b1
                const((out_size, H1)),                     # W2
                const((out_size, 1)),                      # b2
            ],
            out_specs=pl.BlockSpec((out_size, tm), lambda m: (0, m)),
        ),
        compiler_params=pltpu.CompilerParams(
            dimension_semantics=("parallel",),
            vmem_limit_bytes=int(vmem_bytes * 2 + (8 << 20)),
        ),
        cost_estimate=pl.CostEstimate(
            flops=flops, transcendentals=0, bytes_accessed=bytes_accessed),
    )(x_t, w1c, b1, w2, b2)

    out = out[:, :M]                            # drop padded columns (if any)
    if out_size == 1:
        return out[0].reshape(B, S)             # .squeeze(2)
    return out.T.reshape(B, S, out_size)


def init_params(key, *, embed_size, num_hidden1, out_size):
    """Mirror the PyTorch module init (xavier_normal_ weights, default Linear bias).

    Weights are stored in PyTorch's native (out_features, in_features) layout,
    which is exactly what the transposed kernel consumes.
    """
    k1, k2, k3, k4 = jax.random.split(key, 4)

    def xavier_normal(k, fan_out, fan_in):
        std = (2.0 / (fan_in + fan_out)) ** 0.5
        return std * jax.random.normal(k, (fan_out, fan_in), jnp.float32)

    def linear_bias(k, fan_in, fan_out):
        bound = 1.0 / (fan_in ** 0.5)
        return jax.random.uniform(k, (fan_out, 1), jnp.float32, -bound, bound)

    w1 = xavier_normal(k1, num_hidden1, embed_size)      # (H1, E)
    b1 = linear_bias(k2, embed_size, num_hidden1)        # (H1, 1)
    w2 = xavier_normal(k3, out_size, num_hidden1)        # (out, H1)
    b2 = linear_bias(k4, num_hidden1, out_size)          # (out, 1)
    return (w1, b1, w2, b2)


def reference_forward(inputs, params):
    """Pure-JAX reference of the Selector forward pass."""
    w1, b1, w2, b2 = params
    B, S = inputs.shape[0], inputs.shape[1]
    x = inputs.reshape(B, S, -1)
    h = jnp.einsum('bse,he->bsh', x, w1) + b1[:, 0]
    h = jnp.where(h >= 0, h, 0.01 * h)
    o = jnp.einsum('bsh,oh->bso', h, w2) + b2[:, 0]
    if w2.shape[0] == 1:
        o = o[..., 0]
    return o


if __name__ == "__main__":
    # small, lane-friendly shapes: inputs (B, S, 2, 64) -> embed_size = 128
    B, S, A, C = 2, 8, 2, 64
    EMBED, H1, OUT = A * C, 64, 1

    key = jax.random.PRNGKey(0)
    k_in, k_par, k_big = jax.random.split(key, 3)

    inputs = jax.random.normal(k_in, (B, S, A, C), jnp.float32)
    params = init_params(k_par, embed_size=EMBED, num_hidden1=H1, out_size=OUT)

    # f32 path, single-block grid.
    fwd = jax.jit(functools.partial(selector_forward, block_m=512))
    out = jax.block_until_ready(fwd(inputs, params))
    ref = reference_forward(inputs, params)
    assert out.shape == (B, S), out.shape
    assert jnp.allclose(out, ref, atol=2e-4, rtol=2e-4), "f32 mismatch vs JAX reference"

    # multi-block path: M = 3*320 = 960 -> grid of 2 blocks of 512 (with tail pad).
    big_inputs = jax.random.normal(k_big, (3, 320, A, C), jnp.float32)
    out_big = jax.block_until_ready(
        jax.jit(functools.partial(selector_forward, block_m=512))(big_inputs, params))
    ref_big = reference_forward(big_inputs, params)
    assert out_big.shape == (3, 320), out_big.shape
    assert jnp.allclose(out_big, ref_big, atol=2e-4, rtol=2e-4), "multi-block mismatch"

    # bf16 streaming of x / W1 (memory-bound win on v6e/v7x), f32 accumulation.
    out_bf16 = jax.block_until_ready(
        jax.jit(functools.partial(selector_forward, block_m=512,
                                  compute_dtype=jnp.bfloat16))(inputs, params))
    assert jnp.allclose(out_bf16, ref, atol=0.15, rtol=0.15), "bf16 mismatch"

    print("KERNEL_OK")
</pallas_src>

<mosaic_0001>
module attributes {stable_mosaic.version = 11 : i64} {
  func.func @_selector_kernel(%arg0: i32, %arg1: memref<128x16xf32, #tpu.memory_space<vmem>>, %arg2: memref<64x128xf32, #tpu.memory_space<vmem>>, %arg3: memref<64x1xf32, #tpu.memory_space<vmem>>, %arg4: memref<1x64xf32, #tpu.memory_space<vmem>>, %arg5: memref<1x1xf32, #tpu.memory_space<vmem>>, %arg6: memref<1x16xf32, #tpu.memory_space<vmem>>) attributes {dimension_semantics = [#tpu.dimension_semantics<parallel>], iteration_bounds = array<i64: 1>, scalar_prefetch = 0 : i64, scratch_operands = 0 : i64, tpu.core_type = #tpu.core_type<tc>, window_params = [{transform_indices = @transform_0, window_bounds = array<i64: 128, 16>}, {pipeline_mode = #tpu.pipeline_mode<synchronous>, transform_indices = @transform_1, window_bounds = array<i64: 64, 128>}, {pipeline_mode = #tpu.pipeline_mode<synchronous>, transform_indices = @transform_2, window_bounds = array<i64: 64, 1>}, {pipeline_mode = #tpu.pipeline_mode<synchronous>, transform_indices = @transform_3, window_bounds = array<i64: 1, 64>}, {pipeline_mode = #tpu.pipeline_mode<synchronous>, transform_indices = @transform_4, window_bounds = array<i64: 1, 1>}, {transform_indices = @transform_5, window_bounds = array<i64: 1, 16>}]} {
    %c0 = arith.constant 0 : index
    %c0_0 = arith.constant 0 : index
    %0 = vector.load %arg2[%c0, %c0_0] : memref<64x128xf32, #tpu.memory_space<vmem>>, vector<64x128xf32>
    %c0_1 = arith.constant 0 : index
    %c0_2 = arith.constant 0 : index
    %1 = vector.load %arg1[%c0_1, %c0_2] : memref<128x16xf32, #tpu.memory_space<vmem>>, vector<128x16xf32>
    %cst = arith.constant dense<0.000000e+00> : vector<64x16xf32>
    %2 = tpu.matmul %0, %1, %cst {dimension_numbers = #tpu.dot_dimension_numbers<[1], [0], [0], [1], [0, 0, 1, 1], [], []>} : vector<64x128xf32>, vector<128x16xf32>, vector<64x16xf32> -> vector<64x16xf32>
    %c0_3 = arith.constant 0 : index
    %c0_4 = arith.constant 0 : index
    %3 = vector.load %arg3[%c0_3, %c0_4] : memref<64x1xf32, #tpu.memory_space<vmem>>, vector<64x1xf32>
    %4 = vector.broadcast %3 : vector<64x1xf32> to vector<64x16xf32>
    %5 = arith.addf %2, %4 : vector<64x16xf32>
    %cst_5 = arith.constant 0.000000e+00 : f32
    %6 = vector.broadcast %cst_5 : f32 to vector<64x16xf32>
    %7 = arith.cmpf oge, %5, %6 : vector<64x16xf32>
    %cst_6 = arith.constant 0.00999999977 : f32
    %8 = vector.broadcast %cst_6 : f32 to vector<64x16xf32>
    %9 = arith.mulf %8, %5 : vector<64x16xf32>
    %10 = arith.select %7, %5, %9 : vector<64x16xi1>, vector<64x16xf32>
    %c0_7 = arith.constant 0 : index
    %c0_8 = arith.constant 0 : index
    %11 = vector.load %arg4[%c0_7, %c0_8] : memref<1x64xf32, #tpu.memory_space<vmem>>, vector<1x64xf32>
    %cst_9 = arith.constant dense<0.000000e+00> : vector<1x16xf32>
    %12 = tpu.matmul %11, %10, %cst_9 {dimension_numbers = #tpu.dot_dimension_numbers<[1], [0], [0], [1], [0, 0, 1, 1], [], []>} : vector<1x64xf32>, vector<64x16xf32>, vector<1x16xf32> -> vector<1x16xf32>
    %c0_10 = arith.constant 0 : index
    %c0_11 = arith.constant 0 : index
    %13 = vector.load %arg5[%c0_10, %c0_11] : memref<1x1xf32, #tpu.memory_space<vmem>>, vector<1x1xf32>
    %14 = vector.broadcast %13 : vector<1x1xf32> to vector<1x16xf32>
    %15 = arith.addf %12, %14 : vector<1x16xf32>
    %c0_12 = arith.constant 0 : index
    %c0_13 = arith.constant 0 : index
    %16 = vector.load %arg6[%c0_12, %c0_13] : memref<1x16xf32, #tpu.memory_space<vmem>>, vector<1x16xf32>
    tpu.vector_store %arg6[%c0_12, %c0_13], %15 {strides = array<i32>} : memref<1x16xf32, #tpu.memory_space<vmem>>, vector<1x16xf32>,
    return
  }
  func.func @transform_0(%arg0: i32) -> (i32, i32) {
    %c0_i32 = arith.constant 0 : i32
    %c0_i32_0 = arith.constant 0 : i32
    return %c0_i32, %arg0 : i32, i32
  }
  func.func @transform_1(%arg0: i32) -> (i32, i32) {
    %c0_i32 = arith.constant 0 : i32
    %c0_i32_0 = arith.constant 0 : i32
    %c0_i32_1 = arith.constant 0 : i32
    return %c0_i32, %c0_i32_0 : i32, i32
  }
  func.func @transform_2(%arg0: i32) -> (i32, i32) {
    %c0_i32 = arith.constant 0 : i32
    %c0_i32_0 = arith.constant 0 : i32
    %c0_i32_1 = arith.constant 0 : i32
    return %c0_i32, %c0_i32_0 : i32, i32
  }
  func.func @transform_3(%arg0: i32) -> (i32, i32) {
    %c0_i32 = arith.constant 0 : i32
    %c0_i32_0 = arith.constant 0 : i32
    %c0_i32_1 = arith.constant 0 : i32
    return %c0_i32, %c0_i32_0 : i32, i32
  }
  func.func @transform_4(%arg0: i32) -> (i32, i32) {
    %c0_i32 = arith.constant 0 : i32
    %c0_i32_0 = arith.constant 0 : i32
    %c0_i32_1 = arith.constant 0 : i32
    return %c0_i32, %c0_i32_0 : i32, i32
  }
  func.func @transform_5(%arg0: i32) -> (i32, i32) {
    %c0_i32 = arith.constant 0 : i32
    %c0_i32_0 = arith.constant 0 : i32
    return %c0_i32, %arg0 : i32, i32
  }
}

</mosaic_0001>

<bundles_post_ra>
// kernel: squeeze.1
= control target key start
LH: loop header
LB: loop body
LE: loop exit
PB: predicated region body
PF: predicated region fallthrough
CT: control target
= control target key end

     0   :  { %s77_s0 = inlined_call_operand.vmem [shape: f32[16], index: 0, kind: input, shape index: {}]   ;;  %s78_s1 = inlined_call_operand.hbm [shape: f32[2,8], index: 1, kind: output, shape index: {}]  }
   0x1   :  { %v6_v0 = vld [vmem:[%s77_s0] sm:$0x1] }
   0x2   :  { %2 = vsyncpa [#allocation1], 0  ;;  %7 = vst [vmem:[#allocation3] sm:$0x1] %v6_v0  ;;  %vm9_vm0 = vcmask 64512   ;;  %s59_s0 = smov 120  }
   0x3   :  { %s60_s8 = smov [#allocation0]  }
   0x4   :  { %s29_s9 = sshll.u32 %s60_s8, 4  ;;  %s30_s9 = int_to_ptr.vmem [resolvable:$true] %s29_s9 }
   0x5   :  { %s37_s10 = scalar_lea.vmem %s30_s9, 32  ;;  %p42_p1 = scmp.lt.s32.totalorder %s30_s9, %s30_s9 }
   0x6   :  { %p38_p0 = scmp.ne.s32.totalorder %s30_s9, %s37_s10  ;;  %p43_p2 = scmp.lt.s32.totalorder %s37_s10, %s37_s10 }
   0x8   :  { %p44_p3 = por %p43_p2, %p42_p1 }
   0x9   :  { %v11_v1 = vld [vmem:[#allocation3] sm:$0x1]  }
   0xa   :  { %v8_v2 = vld [vmem:[#allocation3] sm:$0x1]   ;;  %12 = vrot.lane.b32.xlu0 %v11_v1, %s59_s0  ;;  %p45_p4 = pnand %p44_p3, %p38_p0 }
   0xb   :  { %10 = vst.msk [vmem:[#allocation2] sm:$0x1] %vm9_vm0, %v8_v2  }
  0x7c   :  { %v13_v3 = vpop.permute.xlu0 %12  }
  0x7d   :  { %16 = vst.msk [vmem:[#allocation2 + $0x1] sm:$0x1] %vm9_vm0, %v13_v3  }
  0x84   :  { %v21_v4 = vld [vmem:[#allocation2] sm:$0x3] }
  0x85   :  { %24 = vst [vmem:[#allocation0] sm:$0x3] %v21_v4 }
  0x86   :  { %48 = shalt.err (!%p45_p4)
}
  0x87   :  { %32 = dma.vmem_to_hbm [thread:$0]  %s30_s9, 32, %s78_s1, [#allocation1]  }
  0x88   :  { %57 = dma.done.wait [#allocation1], 32  }
  0x89   :  { %58 = vsyncadd [#allocation1], 4294967264 }
  0x8a   :  { %34 = vsyncpa [#allocation1], 1 }

// kernel: selector_forward.1
= control target key start
LH: loop header
LB: loop body
LE: loop exit
PB: predicated region body
PF: predicated region fallthrough
CT: control target
= control target key end

     0   :  { %v416_v2 = vmov 0   ;;  %v417_v35 = vmov 0.0   ;;  %vm418_vm0 = vmmov 0   ;;  %vm234_vm9 = vcmask 523264   ;;  %s563_s0 = inlined_call_operand.vmem [shape: f32[128,16], index: 0, kind: input, shape index: {}]   ;;  %s564_s4 = inlined_call_operand.<no memory space> [shape: f32[1,1], index: 4, kind: input, shape index: {}]   ;;  %s565_s1 = inlined_call_operand.vmem [shape: f32[64,128], index: 1, kind: input, shape index: {}]   ;;  %s566_s2 = inlined_call_operand.vmem [shape: f32[64,1], index: 2, kind: input, shape index: {}]   ;;  %s567_s3 = inlined_call_operand.vmem [shape: f32[1,64], index: 3, kind: input, shape index: {}]   ;;  %s568_s5 = inlined_call_operand.vmem [shape: f32[1,16], index: 5, kind: output, shape index: {}]  }
   0x1   :  { %v45_v0 = vld [vmem:[%s563_s0 + $0x78] sm:$0xff]  ;;  %v44_v1 = vld [vmem:[%s563_s0 + $0x70] sm:$0xff]  ;;  %414 = vset.pattern.permute.xlu0 %v416_v2  ;;  %415 = vset.pattern.permute.xlu1 %v416_v2  ;;  %v10_v3 = vstv %s564_s4  ;;  %v43_v4 = vld [vmem:[%s563_s0 + $0x68] sm:$0xff]  ;;  %vm308_vm10 = vcmask 122880  }
   0x2   :  { %348 = vmatprep.subr.mxu0 %v45_v0  ;;  %11 = vst [vmem:[#allocation2] sm:$0x1] %v10_v3  ;;  %v42_v5 = vld [vmem:[%s563_s0 + $0x60] sm:$0xff]  ;;  %v41_v7 = vld [vmem:[%s563_s0 + $0x58] sm:$0xff]  ;;  %v40_v8 = vld [vmem:[%s563_s0 + $0x50] sm:$0xff]  ;;  %392 = vmatprep.subr.mxu1 %v417_v35 }
   0x3   :  { %349 = vmatpush3.msra.mxu0 %v45_v0  ;;  %v22_v6 = vld [vmem:[%s565_s1] sm:$0xff]  ;;  %v53_v9 = vld [vmem:[%s566_s2 + $0x38] sm:$0xff]  ;;  %v51_v10 = vld [vmem:[%s566_s2 + $0x28] sm:$0xff]  ;;  %408 = vmatprep.mubr.msk.f32.mxu1 %vm418_vm0, %v417_v35 }
   0x4   :  { %350 = vmatprep.subr.mxu0 %v44_v1  ;;  %380 = vmatprep.mubr.f32.mxu0 %v22_v6  ;;  %v39_v11 = vld [vmem:[%s563_s0 + $0x48] sm:$0xff]  ;;  %v52_v12 = vld [vmem:[%s566_s2 + $0x30] sm:$0xff]  ;;  %v50_v13 = vld [vmem:[%s566_s2 + $0x20] sm:$0xff] }
   0x5   :  { %351 = vmatpush3.msra.mxu0 %v44_v1  ;;  %91 = vperm.xlu0 %414, %v53_v9   ;;  %v38_v14 = vld [vmem:[%s563_s0 + $0x40] sm:$0xff]  ;;  %v37_v15 = vld [vmem:[%s563_s0 + $0x38] sm:$0xff]  ;;  %v48_v17 = vld [vmem:[%s566_s2 + $0x10] sm:$0xff] }
   0x6   :  { %352 = vmatprep.subr.mxu0 %v43_v4  ;;  %81 = vperm.xlu1 %415, %v51_v10   ;;  %v49_v16 = vld [vmem:[%s566_s2 + $0x18] sm:$0xff]  ;;  %v36_v18 = vld [vmem:[%s563_s0 + $0x30] sm:$0xff]  ;;  %v35_v19 = vld [vmem:[%s563_s0 + $0x28] sm:$0xff] }
   0x7   :  { %353 = vmatpush3.msra.mxu0 %v43_v4  ;;  %v47_v20 = vld [vmem:[%s566_s2 + $0x8] sm:$0xff]  ;;  %v46_v21 = vld [vmem:[%s566_s2] sm:$0xff]  ;;  %v33_v23 = vld [vmem:[%s563_s0 + $0x18] sm:$0xff] }
   0x8   :  { %354 = vmatprep.subr.mxu0 %v42_v5  ;;  %v34_v22 = vld [vmem:[%s563_s0 + $0x20] sm:$0xff]  ;;  %v32_v25 = vld [vmem:[%s563_s0 + $0x10] sm:$0xff]  ;;  %v31_v26 = vld [vmem:[%s563_s0 + $0x8] sm:$0xff] }
   0x9   :  { %355 = vmatpush3.msra.mxu0 %v42_v5  ;;  %86 = vperm.xlu0 %414, %v52_v12   ;;  %v224_v24 = vld [vmem:[#allocation2] sm:$0x1]  ;;  %v23_v28 = vld [vmem:[%s565_s1 + $0x8] sm:$0xff]  ;;  %v24_v29 = vld [vmem:[%s565_s1 + $0x10] sm:$0xff] }
   0xa   :  { %356 = vmatprep.subr.mxu0 %v41_v7  ;;  %76 = vperm.xlu1 %415, %v50_v13   ;;  %v30_v27 = vld [vmem:[%s563_s0] sm:$0xff]  ;;  %v25_v30 = vld [vmem:[%s565_s1 + $0x18] sm:$0xff]  ;;  %v27_v32 = vld [vmem:[%s565_s1 + $0x28] sm:$0xff]  ;;  %v230_v13 = vlaneseq }
   0xb   :  { %357 = vmatpush3.msra.mxu0 %v41_v7  ;;  %v26_v31 = vld [vmem:[%s565_s1 + $0x20] sm:$0xff]  ;;  %v28_v33 = vld [vmem:[%s565_s1 + $0x30] sm:$0xff]  ;;  %v29_v34 = vld [vmem:[%s565_s1 + $0x38] sm:$0xff] }
   0xc   :  { %358 = vmatprep.subr.mxu0 %v40_v8 }
   0xd   :  { %359 = vmatpush3.msra.mxu0 %v40_v8  ;;  %71 = vperm.xlu0 %414, %v49_v16  }
   0xe   :  { %360 = vmatprep.subr.mxu0 %v39_v11  ;;  %66 = vperm.xlu1 %415, %v48_v17  }
   0xf   :  { %361 = vmatpush3.msra.mxu0 %v39_v11  ;;  %v223_v11 = vld [vmem:[%s567_s3] sm:$0x1] }
  0x10   :  { %362 = vmatprep.subr.mxu0 %v38_v14 }
  0x11   :  { %363 = vmatpush3.msra.mxu0 %v38_v14  ;;  %61 = vperm.xlu0 %414, %v47_v20   ;;  %v231_v14 = vshrl.u32 %v230_v13, 7 }
  0x12   :  { %364 = vmatprep.subr.mxu0 %v37_v15  ;;  %56 = vperm.xlu1 %415, %v46_v21  }
  0x13   :  { %365 = vmatpush3.msra.mxu0 %v37_v15  ;;  %v232_v15 = vsub.s32 0, %v231_v14 }
  0x14   :  { %366 = vmatprep.subr.mxu0 %v36_v18 }
  0x15   :  { %367 = vmatpush3.msra.mxu0 %v36_v18  ;;  %227 = vperm.xlu0 %414, %v224_v24  }
  0x16   :  { %368 = vmatprep.subr.mxu0 %v35_v19 }
  0x17   :  { %369 = vmatpush3.msra.mxu0 %v35_v19 }
  0x18   :  { %370 = vmatprep.subr.mxu0 %v34_v22 }
  0x19   :  { %371 = vmatpush3.msra.mxu0 %v34_v22 }
  0x1a   :  { %372 = vmatprep.subr.mxu0 %v33_v23 }
  0x1b   :  { %373 = vmatpush3.msra.mxu0 %v33_v23 }
  0x1c   :  { %374 = vmatprep.subr.mxu0 %v32_v25 }
  0x1d   :  { %375 = vmatpush3.msra.mxu0 %v32_v25 }
  0x1e   :  { %376 = vmatprep.subr.mxu0 %v31_v26 }
  0x1f   :  { %377 = vmatpush3.msra.mxu0 %v31_v26 }
  0x20   :  { %378 = vmatprep.subr.mxu0 %v30_v27 }
  0x21   :  { %379 = vmatpush3.msra.mxu0 %v30_v27 }
  0x22   :  { %381 = vmatmul.mubr.f32.vlgmr.msra.gmra.mxu0 %v23_v28 }
  0x23   :  { %383 = vmatprep.mubr.f32.mxu0 %v24_v29 }
  0x26   :  { %384 = vmatmul.mubr.f32.gmra.mxu0 %v25_v30 }
  0x27   :  { %386 = vmatprep.mubr.f32.mxu0 %v26_v31 }
  0x2a   :  { %387 = vmatmul.mubr.f32.gmra.mxu0 %v27_v32 }
  0x2b   :  { %389 = vmatprep.mubr.f32.mxu0 %v28_v33 }
  0x2e   :  { %390 = vmatmul.mubr.f32.gmra.mxu0 %v29_v34 }
  0x80   :  { %v92_v36 = vpop.permute.xlu0 %91 }
  0x81   :  { %v82_v38 = vpop.permute.xlu1 %81 }
  0x84   :  { %v87_v41 = vpop.permute.xlu0 %86 }
  0x85   :  { %v77_v43 = vpop.permute.xlu1 %76 }
  0x88   :  { %v72_v46 = vpop.permute.xlu0 %71 }
  0x89   :  { %v67_v50 = vpop.permute.xlu1 %66 }
  0x8c   :  { %v62_v59 = vpop.permute.xlu0 %61 }
  0x8d   :  { %v57_v63 = vpop.permute.xlu1 %56 }
  0x90   :  { %v228_v16 = vpop.permute.xlu0 %227 }
  0x91   :  { %v233_v17 = vrot.slane %v228_v16, %v232_v15 }
  0xe2   :  { %v382_v37 = vpop.f32.mrf.mxu0 }
  0xe3   :  { %v166_v0 = vadd.f32 %v382_v37, %v62_v59 }
  0xe4   :  { %v160_v39 = vpop.f32.mrf.mxu0 }
  0xe5   :  { %v161_v3 = vadd.f32 %v160_v39, %v57_v63  ;;  %v208_v6 = vmul.f32 0.01, %v166_v0  ;;  %vm200_vm7 = vcmp.ge.f32.partialorder %v166_v0, 0.0 }
  0xe6   :  { %v385_v40 = vpop.f32.mrf.mxu0 }
  0xe7   :  { %v176_v55 = vadd.f32 %v385_v40, %v72_v46  ;;  %v207_v8 = vmul.f32 0.01, %v161_v3  ;;  %vm199_vm8 = vcmp.ge.f32.partialorder %v161_v3, 0.0  ;;  %v216_v10 = vsel %vm200_vm7, %v166_v0, %v208_v6 }
  0xe8   :  { %v170_v42 = vpop.f32.mrf.mxu0 }
  0xe9   :  { %v171_v60 = vadd.f32 %v170_v42, %v67_v50  ;;  %v210_v1 = vmul.f32 0.01, %v176_v55  ;;  %vm202_vm5 = vcmp.ge.f32.partialorder %v176_v55, 0.0  ;;  %v215_v12 = vsel %vm199_vm8, %v161_v3, %v207_v8 }
  0xea   :  { %v388_v44 = vpop.f32.mrf.mxu0 }
  0xeb   :  { %v186_v48 = vadd.f32 %v388_v44, %v82_v38  ;;  %v209_v4 = vmul.f32 0.01, %v171_v60  ;;  %vm201_vm6 = vcmp.ge.f32.partialorder %v171_v60, 0.0  ;;  %v218_v7 = vsel %vm202_vm5, %v176_v55, %v210_v1 }
  0xec   :  { %v180_v45 = vpop.f32.mrf.mxu0 }
  0xed   :  { %v181_v52 = vadd.f32 %v180_v45, %v77_v43  ;;  %v212_v56 = vmul.f32 0.01, %v186_v48  ;;  %vm204_vm3 = vcmp.ge.f32.partialorder %v186_v48, 0.0  ;;  %v217_v9 = vsel %vm201_vm6, %v171_v60, %v209_v4 }
  0xee   :  { %v391_v47 = vpop.f32.mrf.mxu0 }
  0xef   :  { %v196_v49 = vadd.f32 %v391_v47, %v92_v36  ;;  %v211_v61 = vmul.f32 0.01, %v181_v52  ;;  %vm203_vm4 = vcmp.ge.f32.partialorder %v181_v52, 0.0  ;;  %v220_v2 = vsel %vm204_vm3, %v186_v48, %v212_v56 }
  0xf0   :  { %v190_v51 = vpop.f32.mrf.mxu0 }
  0xf1   :  { %v191_v53 = vadd.f32 %v190_v51, %v87_v41  ;;  %vm206_vm1 = vcmp.ge.f32.partialorder %v196_v49, 0.0  ;;  %v214_v54 = vmul.f32 0.01, %v196_v49  ;;  %v219_v5 = vsel %vm203_vm4, %v181_v52, %v211_v61 }
  0xf3   :  { %v213_v57 = vmul.f32 0.01, %v191_v53  ;;  %v222_v58 = vsel %vm206_vm1, %v196_v49, %v214_v54  ;;  %vm205_vm2 = vcmp.ge.f32.partialorder %v191_v53, 0.0 }
  0xf4   :  { %393 = vmatpush3.msra.mxu1 %v222_v58 }
  0xf5   :  { %394 = vmatprep.subr.mxu1 %v417_v35  ;;  %v221_v62 = vsel %vm205_vm2, %v191_v53, %v213_v57 }
  0xf6   :  { %395 = vmatpush3.msra.mxu1 %v221_v62 }
  0xf7   :  { %396 = vmatprep.subr.mxu1 %v417_v35 }
  0xf8   :  { %397 = vmatpush3.msra.mxu1 %v220_v2 }
  0xf9   :  { %398 = vmatprep.subr.mxu1 %v417_v35 }
  0xfa   :  { %399 = vmatpush3.msra.mxu1 %v219_v5 }
  0xfb   :  { %400 = vmatprep.subr.mxu1 %v417_v35 }
  0xfc   :  { %401 = vmatpush3.msra.mxu1 %v218_v7 }
  0xfd   :  { %402 = vmatprep.subr.mxu1 %v417_v35 }
  0xfe   :  { %403 = vmatpush3.msra.mxu1 %v217_v9 }
  0xff   :  { %404 = vmatprep.subr.mxu1 %v417_v35 }
 0x100   :  { %405 = vmatpush3.msra.mxu1 %v216_v10 }
 0x101   :  { %406 = vmatprep.subr.mxu1 %v417_v35 }
 0x102   :  { %407 = vmatpush3.msra.mxu1 %v215_v12 }
 0x103   :  { %409 = vmatmul.mubr.msk.f32.vlgmr.msra.gmra.mxu1 %vm234_vm9, %v223_v11 }
 0x1c3   :  { %v304_v18 = vpop.f32.mrf.mxu1 }
 0x1c4   :  { %v305_v19 = vadd.f32 %v304_v18, %v233_v17 }
 0x1c5   :  { %v410_v20 = vpop.f32.mrf.mxu1 }
 0x1c6   :  { %309 = vst.msk [vmem:[%s568_s5] sm:$0x1] %vm308_vm10, %v305_v19 }

</bundles_post_ra>
